<compile_context>
chip_gen: v7x
topology: tpu7x:2x2x1
jax: 0.10.0
libtpu: 0.0.40
codegen_flags: <defaults>
</compile_context>

<pallas_src>
import functools

import numpy as np
import jax
import jax.numpy as jnp
from jax.experimental import pallas as pl
from jax.experimental.pallas import tpu as pltpu


def _round_up(x, m):
    return (x + m - 1) // m * m


def _tpu_vmem_and_multicore():
    """Best-effort chip query -> (physical VMEM bytes, multi-TensorCore?).

    v7x is the only current generation with <= 64 MiB VMEM per TensorCore and
    also the only one with 2 TensorCores per chip, so VMEM capacity doubles as
    a cheap proxy for "should the grid have >= 2 parallel steps".  Falls back
    to conservative (v7x-like) numbers if the query is unavailable.
    """
    try:
        cap = int(pltpu.get_tpu_info().vmem_capacity_bytes)
    except Exception:
        cap = 64 << 20
    return cap, cap <= (72 << 20)


# ----------------------------- Pallas kernel --------------------------------
def _patch_proj_kernel(x_ref, w_ref, b_ref, o_ref):
    # x_ref: (tm, K)  streamed patch rows
    # w_ref: (K,  E)  resident projection weight (same block every grid step)
    # b_ref: (1,  E)  resident bias, kept in f32
    # o_ref: (tm, E)  output tile (masked store only if E % 128 != 0 or on the
    #                 ragged last M block)
    acc = jnp.dot(x_ref[...], w_ref[...], preferred_element_type=jnp.float32)
    o_ref[...] = (acc + b_ref[...]).astype(o_ref.dtype)


def _patch_proj(patches, w2d, b2d, *, tm, out_dtype, vmem_limit_bytes):
    """patches: (M, K), w2d: (K, E), b2d: (1, E) -> (M, E).

    M need NOT be divisible by tm: the ragged last block is handled by Pallas
    (unspecified rows on load, masked rows on store), which is safe because M
    is not a contraction dimension.
    """
    M, K = patches.shape
    Kw, E = w2d.shape
    assert Kw == K

    isz_in = np.dtype(patches.dtype).itemsize
    isz_w = np.dtype(w2d.dtype).itemsize
    osz = np.dtype(out_dtype).itemsize
    cost = pl.CostEstimate(
        flops=2 * M * K * E,
        transcendentals=0,
        bytes_accessed=M * K * isz_in + K * E * isz_w + E * 4 + M * E * osz,
    )

    return pl.pallas_call(
        _patch_proj_kernel,
        out_shape=jax.ShapeDtypeStruct((M, E), out_dtype),
        grid_spec=pltpu.PrefetchScalarGridSpec(
            num_scalar_prefetch=0,
            grid=(pl.cdiv(M, tm),),
            in_specs=[
                pl.BlockSpec((tm, K), lambda i: (i, 0)),   # streamed patches
                pl.BlockSpec((K, E), lambda i: (0, 0)),    # resident weight
                pl.BlockSpec((1, E), lambda i: (0, 0)),    # resident f32 bias
            ],
            out_specs=pl.BlockSpec((tm, E), lambda i: (i, 0)),
        ),
        compiler_params=pltpu.CompilerParams(
            dimension_semantics=("parallel",),
            vmem_limit_bytes=vmem_limit_bytes,
            # Let XLA fuse the patchify transpose / cast / K-pad producer into
            # this call's input DMA where it can (no reliance on it for
            # correctness, and harmless if it cannot).
            allow_input_fusion=[True, False, False],
        ),
        cost_estimate=cost,
    )(patches, w2d, b2d)


# ----------------------------- Module wrapper --------------------------------
class PatchEmbedPallas:
    """Pallas port of PatchEmbed (norm_layer=None -> Identity)."""

    def __init__(self, img_size=16, patch_size=8, in_chans=4, embed_dim=32,
                 flatten=True, bias=True, *, key):
        if isinstance(img_size, int):
            img_size = (img_size, img_size)
        if isinstance(patch_size, int):
            patch_size = (patch_size, patch_size)
        self.img_size = tuple(img_size)
        self.patch_size = tuple(patch_size)
        self.grid_size = (img_size[0] // patch_size[0],
                          img_size[1] // patch_size[1])
        self.num_patches = self.grid_size[0] * self.grid_size[1]
        self.flatten = flatten
        self.in_chans = in_chans
        self.embed_dim = embed_dim

        # Deterministic parameter init mimicking nn.Conv2d defaults
        # (kaiming-uniform-ish bound = 1/sqrt(fan_in)).
        kw, kb = jax.random.split(key)
        Ph, Pw = self.patch_size
        fan_in = in_chans * Ph * Pw
        bound = 1.0 / float(np.sqrt(fan_in))
        # conv weight, PyTorch layout: (embed_dim, in_chans, Ph, Pw)
        self.weight = jax.random.uniform(
            kw, (embed_dim, in_chans, Ph, Pw),
            dtype=jnp.float32, minval=-bound, maxval=bound)
        self.bias = (jax.random.uniform(
            kb, (embed_dim,), dtype=jnp.float32, minval=-bound, maxval=bound)
            if bias else jnp.zeros((embed_dim,), jnp.float32))

        # Dense form of the conv weight, computed ONCE here (not per forward):
        # (E, C, Ph, Pw) -> (C*Ph*Pw, E).  K is zero-padded to a multiple of
        # 128 only when the overhead is small (<= 1/8 extra streamed bytes);
        # zero weight rows keep the math exact while making x loads and MXU
        # contraction passes lane-dense.  embed_dim is NOT padded (see header).
        K = in_chans * Ph * Pw
        K_pad = _round_up(K, 128)
        if K % 128 == 0 or (K_pad - K) * 8 > K:
            K_pad = K
        self._K, self._K_pad = K, K_pad

        w2d = jnp.transpose(self.weight.reshape(embed_dim, K))          # (K, E)
        if K_pad != K:
            w2d = jnp.pad(w2d, ((0, K_pad - K), (0, 0)))
        self._w2d_f32 = w2d
        self._w2d_bf16 = w2d.astype(jnp.bfloat16)   # cached once for bf16 path
        self._b2d = self.bias.reshape(1, embed_dim).astype(jnp.float32)
        # TODO(synk): norm_layer is Identity here; plug a Pallas LayerNorm if needed.

    def update_image_size(self, img_size):
        if isinstance(img_size, int):
            img_size = (img_size, img_size)
        self.img_size = tuple(img_size)
        self.grid_size = (img_size[0] // self.patch_size[0],
                          img_size[1] // self.patch_size[1])
        self.num_patches = self.grid_size[0] * self.grid_size[1]

    def __call__(self, x, compute_dtype=None, out_dtype=None):
        # x: (B, C, H, W)  NCHW, like PyTorch Conv2d.
        B, C, H, W = x.shape
        Ph, Pw = self.patch_size
        Gh, Gw = H // Ph, W // Pw
        assert C == self.in_chans
        E = self.embed_dim
        K, K_pad = self._K, self._K_pad
        M = B * Gh * Gw

        cdt = np.dtype(compute_dtype) if compute_dtype is not None else np.dtype(x.dtype)
        odt = np.dtype(out_dtype) if out_dtype is not None else np.dtype(x.dtype)

        if cdt == np.dtype(jnp.bfloat16):
            w2d = self._w2d_bf16                 # cached, no per-call cast
        elif cdt == np.dtype(jnp.float32):
            w2d = self._w2d_f32
        else:
            w2d = self._w2d_f32.astype(cdt)
        b2d = self._b2d                          # bias stays f32 (added on f32 acc)

        # ---- chip-aware tile sizing ----------------------------------------
        vmem_cap, multi_tc = _tpu_vmem_and_multicore()
        if vmem_cap >= (100 << 20):              # v5e / v6e: 128 MiB physical VMEM
            budget, tm_max = 96 << 20, 2048
        else:                                    # v7x: 64 MiB physical VMEM per TC
            budget, tm_max = 40 << 20, 1024
        vmem_limit = int(min(vmem_cap, budget + (16 << 20)))

        isz_in = np.dtype(cdt).itemsize
        isz_w = np.dtype(w2d.dtype).itemsize
        osz = np.dtype(odt).itemsize
        sub = 16 if isz_in == 2 else 8           # sublane multiple of streamed dtype
        # Pallas double-buffers every block-mapped operand (even those with a
        # constant index_map); also count the in-kernel f32 accumulator temp.
        resident = 2 * K_pad * E * isz_w + 2 * E * 4
        per_row = 2 * K_pad * isz_in + 2 * E * osz + E * 4
        # TODO(synk): for huge K*E the resident weight should be K/E-tiled;
        # realistic PatchEmbed sizes fit comfortably, so we only clamp here.
        avail = max(budget - resident, sub * per_row)
        tm_cap = max(sub, avail // per_row)
        if tm_cap >= 256:
            tm_cap = tm_cap // 256 * 256         # MXU-native row granularity
        else:
            tm_cap = max(sub, tm_cap // sub * sub)
        tm = int(min(tm_max, tm_cap))

        if tm >= M:
            tm = M                               # single full-extent block (always legal)
            if multi_tc and M >= 2 * sub:
                # v7x only: give both TensorCores a grid step.
                gran = 256 if M >= 512 else sub
                half = _round_up(pl.cdiv(M, 2), gran)
                if half < M:
                    tm = half

        # ---- patchify (XLA glue: one transpose-copy; cast + K-pad folded in)
        xp = x.reshape(B, C, Gh, Ph, Gw, Pw)
        xp = jnp.transpose(xp, (0, 2, 4, 1, 3, 5))       # (B, Gh, Gw, C, Ph, Pw)
        patches = xp.reshape(M, K).astype(cdt)
        if K_pad != K:
            patches = jnp.pad(patches, ((0, 0), (0, K_pad - K)))

        out = _patch_proj(patches, w2d, b2d, tm=tm, out_dtype=odt,
                          vmem_limit_bytes=vmem_limit)   # (M, E) -- no pad, no slice

        out = out.reshape(B, Gh * Gw, E)
        if not self.flatten:
            out = out.reshape(B, Gh, Gw, E)
            out = jnp.transpose(out, (0, 3, 1, 2))       # NCHW conv output
        return out


# ----------------------------- reference (pure JAX) --------------------------
def _reference(x, weight, bias, patch_size):
    # Strided conv == lax.conv_general_dilated with window_strides = patch.
    y = jax.lax.conv_general_dilated(
        x, weight, window_strides=patch_size, padding="VALID",
        dimension_numbers=("NCHW", "OIHW", "NCHW"))
    y = y + bias.reshape(1, -1, 1, 1)
    B, E, Gh, Gw = y.shape
    return jnp.transpose(y.reshape(B, E, Gh * Gw), (0, 2, 1))


if __name__ == "__main__":
    key = jax.random.PRNGKey(0)
    k_param, k_x = jax.random.split(key)

    B, C, H, W = 2, 4, 16, 16
    P = 8
    embed_dim = 32

    module = PatchEmbedPallas(img_size=H, patch_size=P, in_chans=C,
                              embed_dim=embed_dim, key=k_param)

    x = jax.random.normal(k_x, (B, C, H, W), dtype=jnp.float32)

    # f32 path (matches PyTorch Conv2d semantics)
    fwd = jax.jit(module.__call__)
    out = jax.block_until_ready(fwd(x))

    ref = _reference(x, module.weight, module.bias, (P, P))
    assert out.shape == (B, module.num_patches, embed_dim), out.shape
    assert jnp.allclose(out, ref, atol=1e-4, rtol=1e-4), float(
        jnp.max(jnp.abs(out - ref)))

    # Opt-in bf16 streaming (memory-bound path); f32 accumulate + f32 bias.
    # Intentionally deviates from PyTorch f32 Conv2d numerics (hence loose tol).
    fwd_bf16 = jax.jit(functools.partial(module.__call__,
                                         compute_dtype=jnp.bfloat16))
    out_bf16 = jax.block_until_ready(fwd_bf16(x))
    assert out_bf16.shape == out.shape
    assert jnp.allclose(out_bf16.astype(jnp.float32), ref, atol=1e-1, rtol=1e-1)

    print("KERNEL_OK")
</pallas_src>

<mosaic_0001>
module attributes {stable_mosaic.version = 11 : i64} {
  func.func @_patch_proj_kernel(%arg0: i32, %arg1: memref<8x256xf32, #tpu.memory_space<vmem>>, %arg2: memref<256x32xf32, #tpu.memory_space<vmem>>, %arg3: memref<1x32xf32, #tpu.memory_space<vmem>>, %arg4: memref<8x32xf32, #tpu.memory_space<vmem>>) attributes {dimension_semantics = [#tpu.dimension_semantics<parallel>], iteration_bounds = array<i64: 1>, scalar_prefetch = 0 : i64, scratch_operands = 0 : i64, tpu.core_type = #tpu.core_type<tc>, window_params = [{transform_indices = @transform_0, window_bounds = array<i64: 8, 256>}, {pipeline_mode = #tpu.pipeline_mode<synchronous>, transform_indices = @transform_1, window_bounds = array<i64: 256, 32>}, {pipeline_mode = #tpu.pipeline_mode<synchronous>, transform_indices = @transform_2, window_bounds = array<i64: 1, 32>}, {transform_indices = @transform_3, window_bounds = array<i64: 8, 32>}]} {
    %c0 = arith.constant 0 : index
    %c0_0 = arith.constant 0 : index
    %0 = vector.load %arg1[%c0, %c0_0] : memref<8x256xf32, #tpu.memory_space<vmem>>, vector<8x256xf32>
    %c0_1 = arith.constant 0 : index
    %c0_2 = arith.constant 0 : index
    %1 = vector.load %arg2[%c0_1, %c0_2] : memref<256x32xf32, #tpu.memory_space<vmem>>, vector<256x32xf32>
    %cst = arith.constant dense<0.000000e+00> : vector<8x32xf32>
    %2 = tpu.matmul %0, %1, %cst {dimension_numbers = #tpu.dot_dimension_numbers<[1], [0], [0], [1], [0, 0, 1, 1], [], []>} : vector<8x256xf32>, vector<256x32xf32>, vector<8x32xf32> -> vector<8x32xf32>
    %c0_3 = arith.constant 0 : index
    %c0_4 = arith.constant 0 : index
    %3 = vector.load %arg3[%c0_3, %c0_4] : memref<1x32xf32, #tpu.memory_space<vmem>>, vector<1x32xf32>
    %4 = vector.broadcast %3 : vector<1x32xf32> to vector<8x32xf32>
    %5 = arith.addf %2, %4 : vector<8x32xf32>
    %c0_5 = arith.constant 0 : index
    %c0_6 = arith.constant 0 : index
    %6 = vector.load %arg4[%c0_5, %c0_6] : memref<8x32xf32, #tpu.memory_space<vmem>>, vector<8x32xf32>
    tpu.vector_store %arg4[%c0_5, %c0_6], %5 {strides = array<i32>} : memref<8x32xf32, #tpu.memory_space<vmem>>, vector<8x32xf32>,
    return
  }
  func.func @transform_0(%arg0: i32) -> (i32, i32) {
    %c0_i32 = arith.constant 0 : i32
    %c0_i32_0 = arith.constant 0 : i32
    return %arg0, %c0_i32 : i32, i32
  }
  func.func @transform_1(%arg0: i32) -> (i32, i32) {
    %c0_i32 = arith.constant 0 : i32
    %c0_i32_0 = arith.constant 0 : i32
    %c0_i32_1 = arith.constant 0 : i32
    return %c0_i32, %c0_i32_0 : i32, i32
  }
  func.func @transform_2(%arg0: i32) -> (i32, i32) {
    %c0_i32 = arith.constant 0 : i32
    %c0_i32_0 = arith.constant 0 : i32
    %c0_i32_1 = arith.constant 0 : i32
    return %c0_i32, %c0_i32_0 : i32, i32
  }
  func.func @transform_3(%arg0: i32) -> (i32, i32) {
    %c0_i32 = arith.constant 0 : i32
    %c0_i32_0 = arith.constant 0 : i32
    return %arg0, %c0_i32 : i32, i32
  }
}

</mosaic_0001>

<bundles_post_ra>
// kernel: a_call__.1
= control target key start
LH: loop header
LB: loop body
LE: loop exit
PB: predicated region body
PF: predicated region fallthrough
CT: control target
= control target key end

     0   :  { %s373_s0 = inlined_call_operand.vmem [shape: f32[8,256], index: 0, kind: input, shape index: {}]   ;;  %s374_s1 = inlined_call_operand.vmem [shape: f32[256,32], index: 1, kind: input, shape index: {}]   ;;  %s375_s2 = inlined_call_operand.vmem [shape: f32[1,32], index: 2, kind: input, shape index: {}]   ;;  %s376_s3 = inlined_call_operand.hbm [shape: f32[8,32], index: 3, kind: output, shape index: {}]  }
   0x1   :  { %v33_v0 = vld [vmem:[%s374_s1 + $0x80] sm:$0xff]  ;;  %v34_v1 = vld [vmem:[%s374_s1 + $0x88] sm:$0xff]  ;;  %v35_v5 = vld [vmem:[%s374_s1 + $0x90] sm:$0xff] }
   0x2   :  { %v17_v2 = vld [vmem:[%s374_s1] sm:$0xff]  ;;  %v178_v3 = vpack.c.bf16 %v34_v1, %v33_v0  ;;  %v18_v4 = vld [vmem:[%s374_s1 + $0x8] sm:$0xff]  ;;  %v36_v6 = vld [vmem:[%s374_s1 + $0x98] sm:$0xff] }
   0x3   :  { %v180_v7 = vpack.c.bf16 %v18_v4, %v17_v2  ;;  %v182_v8 = vpack.c.bf16 %v36_v6, %v35_v5  ;;  %v19_v9 = vld [vmem:[%s374_s1 + $0x10] sm:$0xff]  ;;  %v20_v10 = vld [vmem:[%s374_s1 + $0x18] sm:$0xff]  ;;  %v37_v11 = vld [vmem:[%s374_s1 + $0xa0] sm:$0xff] }
   0x4   :  { %179 = vmatprep.subr.bf16.mxu0 %v178_v3  ;;  %v38_v12 = vld [vmem:[%s374_s1 + $0xa8] sm:$0xff]  ;;  %v184_v13 = vpack.c.bf16 %v20_v10, %v19_v9  ;;  %v21_v15 = vld [vmem:[%s374_s1 + $0x20] sm:$0xff]  ;;  %v39_v17 = vld [vmem:[%s374_s1 + $0xb0] sm:$0xff] }
   0x5   :  { %181 = vmatpush3.bf16.msra.mxu0 %v180_v7  ;;  %v186_v14 = vpack.c.bf16 %v38_v12, %v37_v11  ;;  %v22_v16 = vld [vmem:[%s374_s1 + $0x28] sm:$0xff]  ;;  %v40_v18 = vld [vmem:[%s374_s1 + $0xb8] sm:$0xff]  ;;  %v23_v21 = vld [vmem:[%s374_s1 + $0x30] sm:$0xff] }
   0x6   :  { %183 = vmatprep.subr.bf16.mxu0 %v182_v8  ;;  %v188_v19 = vpack.c.bf16 %v22_v16, %v21_v15  ;;  %v190_v20 = vpack.c.bf16 %v40_v18, %v39_v17  ;;  %v24_v22 = vld [vmem:[%s374_s1 + $0x38] sm:$0xff]  ;;  %v41_v23 = vld [vmem:[%s374_s1 + $0xc0] sm:$0xff]  ;;  %v42_v24 = vld [vmem:[%s374_s1 + $0xc8] sm:$0xff] }
   0x7   :  { %v16_v25 = vld [vmem:[%s373_s0 + $0x8] sm:$0xff] }
   0x8   :  { %120 = vmatprep.mubr.f32.mxu0 %v16_v25 }
   0x9   :  { %185 = vmatpush3.bf16.msra.mxu0 %v184_v13 }
   0xa   :  { %187 = vmatprep.subr.bf16.mxu0 %v186_v14 }
   0xb   :  { %8 = vsyncpa [#allocation3], 0  ;;  %v192_v26 = vpack.c.bf16 %v24_v22, %v23_v21  ;;  %v194_v27 = vpack.c.bf16 %v42_v24, %v41_v23  ;;  %v25_v28 = vld [vmem:[%s374_s1 + $0x40] sm:$0xff]  ;;  %v26_v29 = vld [vmem:[%s374_s1 + $0x48] sm:$0xff]  ;;  %s235_s28 = smov [#allocation2]   ;;  %vm126_vm0 = vcmask 261120  }
   0xc   :  { %v43_v30 = vld [vmem:[%s374_s1 + $0xd0] sm:$0xff]  ;;  %v44_v31 = vld [vmem:[%s374_s1 + $0xd8] sm:$0xff]  ;;  %v196_v32 = vpack.c.bf16 %v26_v29, %v25_v28  ;;  %v45_v36 = vld [vmem:[%s374_s1 + $0xe0] sm:$0xff]  ;;  %s134_s29 = sshll.u32 %s235_s28, 4  ;;  %s135_s29 = int_to_ptr.vmem [resolvable:$true] %s134_s29 }
   0xd   :  { %189 = vmatpush3.bf16.msra.mxu0 %v188_v19  ;;  %v198_v33 = vpack.c.bf16 %v44_v31, %v43_v30  ;;  %v27_v34 = vld [vmem:[%s374_s1 + $0x50] sm:$0xff]  ;;  %v28_v35 = vld [vmem:[%s374_s1 + $0x58] sm:$0xff]  ;;  %v46_v37 = vld [vmem:[%s374_s1 + $0xe8] sm:$0xff]  ;;  %p216_p1 = scmp.lt.s32.totalorder %s135_s29, %s135_s29 }
   0xe   :  { %191 = vmatprep.subr.bf16.mxu0 %v190_v20  ;;  %v200_v38 = vpack.c.bf16 %v28_v35, %v27_v34  ;;  %v202_v39 = vpack.c.bf16 %v46_v37, %v45_v36  ;;  %v29_v40 = vld [vmem:[%s374_s1 + $0x60] sm:$0xff]  ;;  %v30_v41 = vld [vmem:[%s374_s1 + $0x68] sm:$0xff]  ;;  %v47_v42 = vld [vmem:[%s374_s1 + $0xf0] sm:$0xff] }
   0xf   :  { %v48_v43 = vld [vmem:[%s374_s1 + $0xf8] sm:$0xff]  ;;  %v204_v44 = vpack.c.bf16 %v30_v41, %v29_v40  ;;  %v31_v46 = vld [vmem:[%s374_s1 + $0x70] sm:$0xff]  ;;  %v15_v49 = vld [vmem:[%s373_s0] sm:$0xff] }
  0x10   :  { %v206_v45 = vpack.c.bf16 %v48_v43, %v47_v42  ;;  %v32_v47 = vld [vmem:[%s374_s1 + $0x78] sm:$0xff]  ;;  %v142_v51 = vld [vmem:[%s375_s2] ss:$0 sm:$0xff]  ;;  %s211_s1 = scalar_lea.vmem %s135_s29, 128 }
  0x11   :  { %193 = vmatpush3.bf16.msra.mxu0 %v192_v26  ;;  %v208_v48 = vpack.c.bf16 %v32_v47, %v31_v46  ;;  %p212_p0 = scmp.ne.s32.totalorder %s135_s29, %s211_s1  ;;  %p217_p2 = scmp.lt.s32.totalorder %s211_s1, %s211_s1 }
  0x12   :  { %195 = vmatprep.subr.bf16.mxu0 %v194_v27 }
  0x13   :  { %p218_p3 = por %p217_p2, %p216_p1 }
  0x15   :  { %197 = vmatpush3.bf16.msra.mxu0 %v196_v32  ;;  %p219_p4 = pnand %p218_p3, %p212_p0 }
  0x16   :  { %199 = vmatprep.subr.bf16.mxu0 %v198_v33 }
  0x19   :  { %201 = vmatpush3.bf16.msra.mxu0 %v200_v38 }
  0x1a   :  { %203 = vmatprep.subr.bf16.mxu0 %v202_v39 }
  0x1d   :  { %205 = vmatpush3.bf16.msra.mxu0 %v204_v44 }
  0x1e   :  { %207 = vmatprep.subr.bf16.mxu0 %v206_v45 }
  0x21   :  { %209 = vmatpush3.bf16.msra.mxu0 %v208_v48 }
  0x24   :  { %121 = vmatmul.mubr.f32.vlgmr.msra.gmra.mrb[0].mxu0 %v15_v49 }
  0xf7   :  { %v175_v50 = vpop.f32.mrb[0].mxu0 }
  0xf8   :  { %v176_v52 = vpop.f32.mrb[1].mxu0 }
  0xf9   :  { %v177_v53 = vadd.f32 %v176_v52, %v175_v50 }
  0xfb   :  { %v123_v54 = vadd.f32 %v177_v53, %v142_v51 }
  0xfd   :  { %127 = vst.msk [vmem:[#allocation2] sm:$0xff] %vm126_vm0, %v123_v54 }
  0xfe   :  { %222 = shalt.err (!%p219_p4)
}
  0xff   :  { %s223_s4 = scalar_lea.hbm %s376_s3, 128 }
 0x100   :  { %p224_p5 = scmp.ne.s32.totalorder %s376_s3, %s223_s4  ;;  %p227_p6 = scmp.lt.u32.totalorder %s223_s4, %s376_s3 }
 0x102   :  { %p229_p7 = pnand %p227_p6, %p224_p5 }
 0x104   :  { %232 = shalt.err (!%p229_p7)
}
 0x105   :  { %137 = dma.vmem_to_hbm [thread:$0]  %s135_s29, 128, %s376_s3, [#allocation3]  }
 0x106   :  { %233 = dma.done.wait [#allocation3], 128  }
 0x107   :  { %234 = vsyncadd [#allocation3], 4294967168 }
 0x108   :  { %141 = vsyncpa [#allocation3], 1 }

</bundles_post_ra>
